<compile_context>
chip_gen: v7x
topology: tpu7x:2x2x1
jax: 0.10.0
libtpu: 0.0.40
codegen_flags: <defaults>
</compile_context>

<pallas_src>
import functools

import jax
import jax.numpy as jnp
from jax.experimental import pallas as pl
from jax.experimental.pallas import tpu as pltpu


# --------------------------------------------------------------------------- #
# Kernel
# --------------------------------------------------------------------------- #
def _rmsnorm_kernel(x_ref, scale_ref, o_ref, *, eps):
    # Hot path: square, mean-reduce over lanes (XLU), rsqrt (EUP), scale (VPU).
    x = x_ref[...].astype(jnp.float32)                            # x.float()
    ms = jnp.mean(x * x, axis=-1, keepdims=True)                  # pow(2).mean(-1, keepdim=True)
    x_normed = (x * jax.lax.rsqrt(ms + eps)).astype(x_ref.dtype)  # .type_as(x)
    # x_normed * scale: scale kept in its parameter dtype so jnp promotion
    # matches torch promotion exactly (f32 param -> f32 math, bf16 -> bf16).
    o_ref[...] = (x_normed * scale_ref[...]).astype(o_ref.dtype)


# --------------------------------------------------------------------------- #
# Helpers
# --------------------------------------------------------------------------- #
def _sublane_align(itemsize: int) -> int:
    # Sub-32-bit dtypes pack along sublanes: bf16 wants 16-row tiles, int8/fp8 32.
    if itemsize >= 4:
        return 8
    if itemsize == 2:
        return 16
    return 32


def _round_up(x: int, m: int) -> int:
    return ((x + m - 1) // m) * m


def _cdiv(a: int, b: int) -> int:
    return -(-a // b)


def _default_target_block_bytes() -> int:
    """Per-generation block-size target for a pure HBM-streaming kernel.

    v5e (~0.8 TB/s): 2 MiB is already >> per-step overhead; don't grow tiles.
    v6e (~1.4 TB/s): roofline knee sits around 2-4 MiB; use 4 MiB.
    v7x (~3.2 TB/s, 64 MiB VMEM): 8 MiB blocks needed to amortize step cost.
    """
    try:
        kind = jax.devices()[0].device_kind.lower()
    except Exception:
        return 4 << 20
    if "v7" in kind:
        return 8 << 20
    if "v6" in kind:
        return 4 << 20
    if "v5" in kind and ("lite" in kind or "v5e" in kind):
        return 2 << 20
    return 4 << 20


def _pick_row_tile(rows, dim, in_itemsize, out_itemsize, target_block_bytes, align):
    """Row tile giving ~target_block_bytes for the largest block, sublane
    aligned, and small enough that the grid has >= ~8 steps when rows allow
    (keeps the double-buffer pipeline fed and gives >=4 steps per TC on a
    2-TensorCore v7x chip when the parallel axis is megacore-sharded)."""
    per_row = dim * max(in_itemsize, out_itemsize)
    tile = max(align, (target_block_bytes // per_row) // align * align)
    min_steps = 8
    steps_cap = _round_up(_cdiv(rows, min_steps), align)
    return max(align, min(tile, steps_cap))


def _vmem_need(row_tile, dim, in_itemsize, out_itemsize):
    """Double-buffered in/out blocks + ~2x f32 block for in-kernel temporaries
    (the f32 upcast stays live across the lane reduction) + resident scale."""
    in_block = row_tile * dim * in_itemsize
    out_block = row_tile * dim * out_itemsize
    f32_block = row_tile * dim * 4
    return 2 * (in_block + out_block) + 2 * f32_block + 2 * dim * 4 + (1 << 20)


def _rmsnorm_xla(x, scale, eps, out_dtype):
    """Plain-XLA path: lane-sparse dims, tiny inputs, degenerate shapes."""
    x_fp32 = x.astype(jnp.float32)
    ms = jnp.mean(x_fp32 * x_fp32, axis=-1, keepdims=True)
    x_normed = (x_fp32 * jax.lax.rsqrt(ms + eps)).astype(x.dtype)
    return (x_normed * scale).astype(out_dtype)


# --------------------------------------------------------------------------- #
# Public wrapper
# --------------------------------------------------------------------------- #
def rmsnorm2d(x, scale, eps: float = 1e-6, out_dtype=None,
              target_block_bytes: int | None = None,
              small_input_bytes: int = 1 << 21):
    """RMSNorm over the last axis of x (Pallas TPU kernel).

    x:         (..., dim) array
    scale:     (dim,) parameter (f32 in the PyTorch module)
    out_dtype: defaults to promote(x.dtype, scale.dtype) for exact PyTorch
               parity; pass x.dtype to halve write bandwidth when the f32
               output isn't needed (recommended for bf16 activations).
    """
    dim = x.shape[-1]
    if out_dtype is None:
        out_dtype = jnp.promote_types(x.dtype, scale.dtype)
    out_dtype = jnp.dtype(out_dtype)

    rows = 1
    for s in x.shape[:-1]:
        rows *= s

    in_itemsize = x.dtype.itemsize
    out_itemsize = out_dtype.itemsize
    total_bytes = rows * dim * (in_itemsize + out_itemsize)

    # Bailouts: degenerate / lane-sparse / tiny inputs -> fused XLA path.
    #  * dim % 128 != 0: every Pallas load/store would be a masked partial vreg.
    #  * tiny inputs: fixed pallas_call + grid setup overhead dominates.
    if rows == 0 or dim % 128 != 0 or total_bytes < small_input_bytes:
        return _rmsnorm_xla(x, scale, eps, out_dtype)

    orig_shape = x.shape
    x2d = x.reshape(rows, dim)
    scale2d = scale.reshape(1, dim)

    if target_block_bytes is None:
        target_block_bytes = _default_target_block_bytes()

    align = max(_sublane_align(in_itemsize), _sublane_align(out_itemsize))
    row_tile = _pick_row_tile(rows, dim, in_itemsize, out_itemsize,
                              target_block_bytes, align)

    # Shrink-to-fit against a VMEM cap that holds on v5e/v6e (128 MiB) and
    # v7x (64 MiB per TC, 32 MiB scoped default) including f32 temporaries.
    vmem_cap = 48 << 20
    while row_tile > align and _vmem_need(row_tile, dim, in_itemsize, out_itemsize) > vmem_cap:
        row_tile = max(align, (row_tile // 2) // align * align)
    if _vmem_need(row_tile, dim, in_itemsize, out_itemsize) > vmem_cap:
        # Pathologically wide rows: even the minimum aligned tile won't fit.
        return _rmsnorm_xla(x, scale, eps, out_dtype)

    # Ragged final block is handled by Pallas: out-of-range output rows are
    # dropped, and the garbage rows loaded into the tail of the last input
    # block only affect those dropped rows (rows are independent).
    grid = (_cdiv(rows, row_tile),)

    vmem_limit = int(min(max(_vmem_need(row_tile, dim, in_itemsize, out_itemsize),
                             16 << 20), vmem_cap))

    kernel = functools.partial(_rmsnorm_kernel, eps=eps)

    out2d = pl.pallas_call(
        kernel,
        out_shape=jax.ShapeDtypeStruct((rows, dim), out_dtype),
        grid_spec=pltpu.PrefetchScalarGridSpec(
            num_scalar_prefetch=0,
            grid=grid,
            in_specs=[
                pl.BlockSpec((row_tile, dim), lambda i: (i, 0)),
                pl.BlockSpec((1, dim), lambda i: (0, 0)),
            ],
            out_specs=pl.BlockSpec((row_tile, dim), lambda i: (i, 0)),
        ),
        compiler_params=pltpu.CompilerParams(
            # Single row axis marked parallel so it megacore-shards across the
            # two v7x TensorCores; >=8 grid steps keep both cores pipelined.
            dimension_semantics=("parallel",),
            vmem_limit_bytes=vmem_limit,
        ),
    )(x2d, scale2d)

    return out2d.reshape(orig_shape[:-1] + (dim,))


def rmsnorm2d_ref(x, scale, eps: float = 1e-6):
    """Pure-JAX reference matching the PyTorch forward exactly."""
    x_fp32 = x.astype(jnp.float32)
    ms = jnp.mean(x_fp32 * x_fp32, axis=-1, keepdims=True)
    x_normed = (x_fp32 * jax.lax.rsqrt(ms + eps)).astype(x.dtype)
    return x_normed * scale  # jnp promotion matches torch promotion here


# --------------------------------------------------------------------------- #
# Test
# --------------------------------------------------------------------------- #
if __name__ == "__main__":
    key = jax.random.PRNGKey(0)
    k1, k2 = jax.random.split(key)

    # Small shape consistent with the module: (batch, channels, spatial, dim),
    # dim a multiple of 128 so the lane-dense Pallas path is exercised.
    batch, channels, spatial, dim = 2, 4, 16, 128
    x = jax.random.normal(k1, (batch, channels, spatial, dim), dtype=jnp.float32)
    scale = jnp.ones((dim,), dtype=jnp.float32)  # module init: torch.ones(dim)

    # 1) f32 path through the Pallas kernel (small_input_bytes=0 forces Pallas
    #    even at this tiny test size; real workloads keep the bailout).
    out = jax.block_until_ready(rmsnorm2d(x, scale, eps=1e-6, small_input_bytes=0))
    ref = rmsnorm2d_ref(x, scale, eps=1e-6)
    assert out.shape == x.shape, (out.shape, x.shape)
    assert jnp.allclose(out, ref, atol=1e-5, rtol=1e-5), "f32 mismatch vs reference"

    # 2) bf16 input, ragged row count (rows % tile != 0), promoted f32 output
    #    (PyTorch-parity default) -- exercises the partial final block.
    x2 = jax.random.normal(k2, (3, 5, 7, dim), dtype=jnp.bfloat16)
    out2 = jax.block_until_ready(rmsnorm2d(x2, scale, eps=1e-6, small_input_bytes=0))
    ref2 = rmsnorm2d_ref(x2, scale, eps=1e-6)
    assert out2.shape == x2.shape and out2.dtype == jnp.float32
    assert jnp.allclose(out2, ref2, atol=5e-2, rtol=5e-2), "bf16->f32 mismatch vs reference"

    # 3) bf16 input, bf16 output (the recommended bandwidth-saving mode).
    out3 = jax.block_until_ready(
        rmsnorm2d(x2, scale, eps=1e-6, out_dtype=jnp.bfloat16, small_input_bytes=0))
    assert out3.dtype == jnp.bfloat16
    assert jnp.allclose(out3.astype(jnp.float32), ref2, atol=5e-2, rtol=5e-2), \
        "bf16->bf16 mismatch vs reference"

    # 4) Default call (no forcing) exercises the small-input XLA bailout.
    out4 = jax.block_until_ready(rmsnorm2d(x, scale, eps=1e-6))
    assert jnp.allclose(out4, ref, atol=1e-5, rtol=1e-5), "bailout path mismatch"

    print("KERNEL_OK")
</pallas_src>

<mosaic_0001>
module attributes {stable_mosaic.version = 11 : i64} {
  func.func @_rmsnorm_kernel(%arg0: i32, %arg1: memref<16x128xf32, #tpu.memory_space<vmem>>, %arg2: memref<1x128xf32, #tpu.memory_space<vmem>>, %arg3: memref<16x128xf32, #tpu.memory_space<vmem>>) attributes {dimension_semantics = [#tpu.dimension_semantics<parallel>], iteration_bounds = array<i64: 8>, scalar_prefetch = 0 : i64, scratch_operands = 0 : i64, tpu.core_type = #tpu.core_type<tc>, window_params = [{transform_indices = @transform_0, window_bounds = array<i64: 16, 128>}, {pipeline_mode = #tpu.pipeline_mode<synchronous>, transform_indices = @transform_1, window_bounds = array<i64: 1, 128>}, {transform_indices = @transform_2, window_bounds = array<i64: 16, 128>}]} {
    %c0 = arith.constant 0 : index
    %c0_0 = arith.constant 0 : index
    %0 = vector.load %arg1[%c0, %c0_0] : memref<16x128xf32, #tpu.memory_space<vmem>>, vector<16x128xf32>
    %1 = arith.mulf %0, %0 : vector<16x128xf32>
    %cst = arith.constant dense<0.000000e+00> : vector<16xf32>
    %2 = vector.multi_reduction <add>, %1, %cst [1] : vector<16x128xf32> to vector<16xf32>
    %3 = vector.shape_cast %2 : vector<16xf32> to vector<16x1xf32>
    %cst_1 = arith.constant 1.280000e+02 : f32
    %4 = vector.broadcast %cst_1 : f32 to vector<16x1xf32>
    %5 = arith.divf %3, %4 : vector<16x1xf32>
    %cst_2 = arith.constant 9.99999997E-7 : f32
    %6 = vector.broadcast %cst_2 : f32 to vector<16x1xf32>
    %7 = arith.addf %5, %6 : vector<16x1xf32>
    %8 = math.rsqrt %7 : vector<16x1xf32>
    %9 = vector.broadcast %8 : vector<16x1xf32> to vector<16x128xf32>
    %10 = arith.mulf %0, %9 : vector<16x128xf32>
    %c0_3 = arith.constant 0 : index
    %c0_4 = arith.constant 0 : index
    %11 = vector.load %arg2[%c0_3, %c0_4] : memref<1x128xf32, #tpu.memory_space<vmem>>, vector<1x128xf32>
    %12 = vector.broadcast %11 : vector<1x128xf32> to vector<16x128xf32>
    %13 = arith.mulf %10, %12 : vector<16x128xf32>
    %c0_5 = arith.constant 0 : index
    %c0_6 = arith.constant 0 : index
    %14 = vector.load %arg3[%c0_5, %c0_6] : memref<16x128xf32, #tpu.memory_space<vmem>>, vector<16x128xf32>
    tpu.vector_store %arg3[%c0_5, %c0_6], %13 {strides = array<i32>} : memref<16x128xf32, #tpu.memory_space<vmem>>, vector<16x128xf32>,
    return
  }
  func.func @transform_0(%arg0: i32) -> (i32, i32) {
    %c0_i32 = arith.constant 0 : i32
    %c0_i32_0 = arith.constant 0 : i32
    return %arg0, %c0_i32 : i32, i32
  }
  func.func @transform_1(%arg0: i32) -> (i32, i32) {
    %c0_i32 = arith.constant 0 : i32
    %c0_i32_0 = arith.constant 0 : i32
    %c0_i32_1 = arith.constant 0 : i32
    return %c0_i32, %c0_i32_0 : i32, i32
  }
  func.func @transform_2(%arg0: i32) -> (i32, i32) {
    %c0_i32 = arith.constant 0 : i32
    %c0_i32_0 = arith.constant 0 : i32
    return %arg0, %c0_i32 : i32, i32
  }
}

</mosaic_0001>

<bundles_post_ra>
// kernel: tpu_custom_call.1
= control target key start
LH: loop header
LB: loop body
LE: loop exit
PB: predicated region body
PF: predicated region fallthrough
CT: control target
= control target key end

     0   :  { %7 = vsyncpa [#allocation3], 0  ;;  %s632_s0 = inlined_call_operand.hbm [shape: f32[128,128], index: 0, kind: input, shape index: {}]   ;;  %s633_s1 = inlined_call_operand.vmem [shape: f32[1,128], index: 1, kind: input, shape index: {}]   ;;  %s634_s2 = inlined_call_operand.hbm [shape: f32[128,128], index: 2, kind: output, shape index: {}]  }
   0x1   :  { %9 = vsyncpa [#allocation3 + $0x1], 0 }
   0x2   :  { %10 = vsyncpa [#allocation4], 0 }
   0x3   :  { %12 = vsyncpa [#allocation4 + $0x1], 0  ;;  %s469_s9 = smov 0   ;;  %s471_s10 = smov 0  }
   0x4   :  { %s473_s11 = smov 0   ;;  %s475_s12 = smov 0  }
   0x5 LB: > { %s490_s13 = sadd.s32 4294967295, %s446_s12   ;;  %s279_s14 = sadd.s32 4294967294, %s446_s12   ;;  %s446_s12 = sphi %s475_s12, %s646_s12   ;;  %s442_s11 = sphi %s473_s11, %s645_s11   ;;  %s438_s10 = sphi %s471_s10, %s644_s10   ;;  %s434_s9 = sphi %s469_s9, %s643_s9  }
   0x6   : > { %s494_s15 = sadd.s32 1, %s446_s12   ;;  %s25_s16 = sadd.s32 1, %s442_s11 }
   0x7   : > { %s22_s17 = ssub.s32 %s446_s12, %s494_s15  ;;  %p32_p0 = scmp.ne.s32.totalorder %s442_s11, %s438_s10 }
   0x8   : > { %p23_p1 = scmp.eq.s32.totalorder %s22_s17, 0  ;;  %p33_p2 = scmp.eq.s32.totalorder %s446_s12, 0 }
   0x9   : > { %p38_p3 = scmp.ne.s32.totalorder %s438_s10, %s434_s9  ;;  %p39_p4 = scmp.eq.s32.totalorder %s490_s13, 0 }
   0xa   : > { %s506_s18 = scalar_select %p23_p1, %s442_s11, %s25_s16  }
   0xb   : > { %p508_p5 = por %p33_p2, %p32_p0  ;;  %p512_p6 = por %p39_p4, %p38_p3 }
   0xc   : > { %p83_p7 = scmp.eq.s32.totalorder %s490_s13, 7  ;;  %p89_p8 = scmp.eq.s32.totalorder %s279_s14, 7 }
   0xd   : > { %p308_p9 = scmp.lt.s32.totalorder %s446_s12, 8  ;;  %s112_s23 = sand.u32 1, %s442_s11  }
   0xe   : > { %p518_p10 = por %p83_p7, %p32_p0  ;;  %p522_p11 = por %p89_p8, %p38_p3 }
   0xf   : > { %s294_s24 = sshll.u32 %s446_s12, 8  ;;  %s282_s25 = sshll.u32 %s112_s23, 4 }
  0x10   : > { %s638_s21 = scalar_select %p518_p10, 1, 0 }
  0x11   : > { %s639_s22 = scalar_select %p522_p11, 1, 0 }
  0x12   : > { %s531_s28 = scalar_lea.hbm %s632_s0, %s294_s24  ;;  %s116_s29 = scalar_lea.vmem [#allocation2], %s282_s25 }
  0x13   : > { %s123_s30 = sshll.u32 %s116_s29, 4  ;;  %p535_p12 = pnand %p308_p9, %p508_p5  ;;  %s539_s30 = int_to_ptr.vmem [resolvable:$true] %s123_s30 }
  0x14   : > { %s541_s4 = scalar_lea.sflag [#allocation3], %s112_s23  ;;  %s350_s5 = scalar_lea.hbm %s531_s28, 256 }
  0x15   : > { %p351_p13 = scmp.ne.s32.totalorder %s531_s28, %s350_s5  ;;  %p352_p0 = pneg %p535_p12 }
  0x16   : > { %s355_s8 = scalar_lea.hbm %s632_s0, 2048  ;;  %p356_p3 = scmp.lt.u32.totalorder %s531_s28, %s632_s0 }
  0x17   : > { %p353_p1 = pnand %p352_p0, %p351_p13  ;;  %p357_p4 = scmp.lt.u32.totalorder %s355_s8, %s350_s5 }
  0x18   : > { %p359_p7 = scmp.lt.u32.totalorder %s350_s5, %s531_s28 }
  0x19   : > { %p354_p2 = pneg %p353_p1  ;;  %p358_p5 = por %p357_p4, %p356_p3 }
  0x1b   : > { %p360_p8 = por %p359_p7, %p358_p5 }
  0x1d   : > { %p361_p9 = pnand %p360_p8, %p354_p2 }
  0x1f   : > { %364 = shalt.err (!%p361_p9)
}
  0x20   : > { %s365_s17 = scalar_lea.vmem %s539_s30, 256  ;;  %s448_s19 = smov [#allocation2]  }
  0x21   : > { %p366_p13 = scmp.ne.s32.totalorder %s539_s30, %s365_s17  ;;  %s370_s23 = sshll.u32 %s448_s19, 4  ;;  %s371_s23 = int_to_ptr.vmem [resolvable:$false] %s370_s23 }
  0x22   : > { %s372_s24 = scalar_lea.vmem %s371_s23, 512  ;;  %p373_p10 = scmp.lt.s32.totalorder %s539_s30, %s371_s23 }
  0x23   : > { %p368_p1 = pnand %p366_p13, %p352_p0  ;;  %p374_p3 = scmp.lt.s32.totalorder %s372_s24, %s365_s17 }
  0x25   : > { %p369_p11 = pneg %p368_p1  ;;  %p375_p4 = por %p374_p3, %p373_p10 }
  0x27   : > { %p376_p5 = pnand %p375_p4, %p369_p11 }
  0x29   : > { %379 = shalt.err (!%p376_p5)
}
  0x2a   : > { %s449_s25 = smov 128   ;;  %s450_s26 = smov 8  }
  0x2b   : > { %303 = dma.hbm_to_vmem [thread:$0]  (!%p535_p12), %s531_s28, 256, %s539_s30, %s541_s4, %s449_s25, %s449_s25, %s450_s26  }
  0x2c   : > { %p285_p0 = scmp.ge.s32.totalorder %s446_s12, 1  ;;  %p131_p2 = scmp.lt.s32.totalorder %s446_s12, 9 }
  0x2e   : > { %p132_p7 = pnand %p285_p0, %p131_p2 }
  0x2f   : > { %s572_s27 = sand.u32 (!%p132_p7), 1, %s438_s10  }
  0x30   : > { %135 = sbr.rel (%p132_p7) target bundleno = 239 (0xef), region = 28  ;;  %s286_s29 = sshll.u32 (!%p132_p7), %s572_s27, 4 }
  0x31   : > { %s138_s5 = scalar_lea.sflag (!%p132_p7), [#allocation3], %s572_s27  ;;  %s141_s6 = scalar_lea.vmem (!%p132_p7), [#allocation2], %s286_s29 }
  0x37   : > { %425 = dma.done.wait (%p512_p6), %s138_s5, 256  }
  0x38   : > { %427 = vsyncadd (%p512_p6), %s138_s5, 4294967040  ;;  %v164_v0 = vld [vmem:[%s141_s6] sm:$0xff]  ;;  %v165_v1 = vld [vmem:[%s141_s6 + $0x8] sm:$0xff]  ;;  %s295_s30 = sshll.u32 %s490_s13, 8  ;;  %s161_s3 = scalar_lea.vmem [#allocation5], %s286_s29 }
  0x39   : > { %v166_v2 = vmul.f32 %v164_v0, %v164_v0  ;;  %v167_v3 = vmul.f32 %v165_v1, %v165_v1  ;;  %v288_v11 = vld [vmem:[%s633_s1] ss:$0 sm:$0xff]  ;;  %s206_s4 = sshll.u32 %s161_s3, 4  ;;  %s587_s14 = scalar_lea.hbm %s634_s2, %s295_s30  ;;  %s589_s4 = int_to_ptr.vmem [resolvable:$true] %s206_s4 }
  0x3a   : > { %s193_s16 = scalar_lea.sflag [#allocation4], %s572_s27  ;;  %s380_s17 = scalar_lea.vmem %s589_s4, 256 }
  0x3b   : > { %168 = vadd.xlane.f32.xlu0 %v166_v2  ;;  %p381_p6 = scmp.ne.s32.totalorder %s589_s4, %s380_s17  ;;  %p641_p10 = scmp.ne.s32.totalorder %s638_s21, 0 }
  0x3c   : > { %s451_s13 = smov [#allocation5]  }
  0x3d   : > { %p382_p11 = pnand %p381_p6, %p641_p10  ;;  %s384_s19 = sshll.u32 %s451_s13, 4  ;;  %s385_s19 = int_to_ptr.vmem [resolvable:$false] %s384_s19 }
  0x3e   : > { %s386_s23 = scalar_lea.vmem %s385_s19, 512  ;;  %p387_p8 = scmp.lt.s32.totalorder %s589_s4, %s385_s19 }
  0x3f   : > { %170 = vadd.xlane.f32.xlu0 %v167_v3  ;;  %p383_p12 = pneg %p382_p11  ;;  %p388_p9 = scmp.lt.s32.totalorder %s386_s23, %s380_s17 }
  0x41   : > { %p389_p13 = por %p388_p9, %p387_p8 }
  0x43   : > { %p390_p1 = pnand %p389_p13, %p383_p12 }
  0xc8   : > { %v169_v4 = vpop.xlane.xlu0 %168 }
  0xc9   : > { %v173_v5 = vmul.f32 0.0078125, %v169_v4 }
  0xcb   : > { %v175_v6 = vadd.f32 1e-06, %v173_v5 }
  0xcc   : > { %v171_v7 = vpop.xlane.xlu0 %170 }
  0xcd   : > { %346 = vrsqrt.f32 %v175_v6  ;;  %v174_v8 = vmul.f32 0.0078125, %v171_v7 }
  0xcf   : > { %v176_v9 = vadd.f32 1e-06, %v174_v8 }
  0xd1   : > { %348 = vrsqrt.f32 %v176_v9 }
  0xd7   : > { %v347_v10 = vpop.eup %346 }
  0xd8   : > { %v179_v12 = vmul.f32 %v347_v10, %v164_v0 }
  0xda   : > { %v188_v13 = vmul.f32 %v288_v11, %v179_v12 }
  0xdb   : > { %v349_v14 = vpop.eup %348 }
  0xdc   : > { %v180_v15 = vmul.f32 %v349_v14, %v165_v1  ;;  %190 = vst [vmem:[%s161_s3] sm:$0xff] %v188_v13 }
  0xde   : > { %v189_v16 = vmul.f32 %v288_v11, %v180_v15 }
  0xe0   : > { %191 = vst [vmem:[%s161_s3 + $0x8] sm:$0xff] %v189_v16 }
  0xe1   : > { %393 = shalt.err (!%p390_p1)
}
  0xe2   : > { %s394_s24 = scalar_lea.hbm %s587_s14, 256  ;;  %s398_s29 = scalar_lea.hbm %s634_s2, 2048 }
  0xe3   : > { %p395_p3 = scmp.ne.s32.totalorder %s587_s14, %s394_s24  ;;  %p399_p0 = scmp.lt.u32.totalorder %s587_s14, %s634_s2 }
  0xe4   : > { %p400_p2 = scmp.lt.u32.totalorder %s398_s29, %s394_s24  ;;  %p402_p6 = scmp.lt.u32.totalorder %s394_s24, %s587_s14 }
  0xe5   : > { %p396_p4 = pnand %p395_p3, %p641_p10 }
  0xe6   : > { %p401_p7 = por %p400_p2, %p399_p0 }
  0xe7   : > { %p397_p5 = pneg %p396_p4 }
  0xe8   : > { %p403_p11 = por %p402_p6, %p401_p7 }
  0xea   : > { %p404_p12 = pnand %p403_p11, %p397_p5 }
  0xec   : > { %407 = shalt.err (!%p404_p12)
}
  0xed   : > { %s452_s28 = smov 128   ;;  %s453_s20 = smov 8  }
  0xee   : > { %298 = dma.vmem_to_hbm [thread:$0]  (%p641_p10), %s589_s4, 256, %s587_s14, %s193_s16, %s452_s28, %s452_s28, %s453_s20  }
  0xef PF: > { %p309_p8 = scmp.ge.s32.totalorder %s446_s12, 2  ;;  %s221_s30 = sand.u32 1, %s434_s9  }
  0xf0   : > { %p642_p9 = scmp.ne.s32.totalorder %s639_s22, 0  ;;  %s222_s3 = scalar_lea.sflag [#allocation4], %s221_s30 }
  0xf2   : > { %p305_p13 = pnand %p309_p8, %p642_p9 }
  0xf4   : > { %429 = dma.done.wait (!%p305_p13), %s222_s3, 256  }
  0xf5   : > { %431 = vsyncadd (!%p305_p13), %s222_s3, 4294967040  ;;  %p15_p1 = scmp.ge.s32.totalorder %s494_s15, 10   ;;  %s643_s9 = smov %s438_s10 }
  0xf6   : > { %s644_s10 = smov %s442_s11  ;;  %s645_s11 = smov %s506_s18 }
  0xf7   : > { %s646_s12 = smov %s494_s15  ;;  %17 = sbr.rel (!%p15_p1) target bundleno = 5 (0x5), region = 73 }
  0xfe   :  { %227 = vsyncpa [#allocation3], 1 }
  0xff   :  { %229 = vsyncpa [#allocation3 + $0x1], 1 }
 0x100   :  { %230 = vsyncpa [#allocation4], 1 }
 0x101   :  { %232 = vsyncpa [#allocation4 + $0x1], 1 }

</bundles_post_ra>
